<compile_context>
chip_gen: v7x
topology: tpu7x:2x2x1
jax: 0.10.0
libtpu: 0.0.40
codegen_flags: <defaults>
</compile_context>

<pallas_src>
import functools

import jax
import jax.numpy as jnp
from jax import lax
from jax.experimental import pallas as pl
from jax.experimental.pallas import tpu as pltpu

NEG_SLOPE = 0.2
BN_EPS = 0.8
_VMEM_LIMIT = 32 * 1024 * 1024


def _round_up(n, m):
    return ((n + m - 1) // m) * m


def _leaky_relu(x):
    return jnp.where(x > 0, x, NEG_SLOPE * x)


def _bn_scale_shift(ssum, ssq, gamma, beta, inv_n):
    """Fold training-mode BatchNorm1d (biased var, eps=0.8) into scale/shift."""
    mean = ssum * inv_n
    var = ssq * inv_n - mean * mean          # biased variance
    inv = lax.rsqrt(var + BN_EPS)            # EUP rsqrt (own VLIW slot)
    scale = gamma * inv
    shift = beta - mean * scale
    return scale, shift


def _row_mask(i, tb, n_valid):
    """(tb, 1) f32 mask of rows that belong to the true (unpadded) batch."""
    row = i * tb + lax.broadcasted_iota(jnp.int32, (tb, 1), 0)
    return (row < n_valid).astype(jnp.float32)


# ---------------------------------------------------------------------------
# Stage 1: Linear(dim,64) -> LeakyReLU -> Linear(64,256); accumulate BN1 stats.
# ---------------------------------------------------------------------------
def _stage1_kernel(x_ref, w1_ref, b1_ref, w2_ref, b2_ref,
                   h2_ref, ssum_ref, ssq_ref, *, tb, n_valid):
    i = pl.program_id(0)

    @pl.when(i == 0)
    def _():
        ssum_ref[...] = jnp.zeros_like(ssum_ref)
        ssq_ref[...] = jnp.zeros_like(ssq_ref)

    x = x_ref[...]
    h1 = jnp.dot(x.astype(jnp.bfloat16), w1_ref[...],
                 preferred_element_type=jnp.float32) + b1_ref[...]
    h1 = _leaky_relu(h1)
    h2 = jnp.dot(h1.astype(jnp.bfloat16), w2_ref[...],
                 preferred_element_type=jnp.float32) + b2_ref[...]
    h2_ref[...] = h2

    valid = _row_mask(i, tb, n_valid)
    hv = h2 * valid
    ssum_ref[...] += jnp.sum(hv, axis=0, keepdims=True)
    ssq_ref[...] += jnp.sum(hv * h2, axis=0, keepdims=True)


# ---------------------------------------------------------------------------
# Stage 2: BN1 -> LeakyReLU -> Linear(256,256); accumulate BN2 stats.
# ---------------------------------------------------------------------------
def _stage2_kernel(h2_ref, ssum1_ref, ssq1_ref, g_ref, be_ref, w3_ref, b3_ref,
                   h3_ref, ssum2_ref, ssq2_ref, *, tb, n_valid, inv_n):
    i = pl.program_id(0)

    @pl.when(i == 0)
    def _():
        ssum2_ref[...] = jnp.zeros_like(ssum2_ref)
        ssq2_ref[...] = jnp.zeros_like(ssq2_ref)

    scale, shift = _bn_scale_shift(ssum1_ref[...], ssq1_ref[...],
                                   g_ref[...], be_ref[...], inv_n)
    a = _leaky_relu(h2_ref[...] * scale + shift)
    h3 = jnp.dot(a.astype(jnp.bfloat16), w3_ref[...],
                 preferred_element_type=jnp.float32) + b3_ref[...]
    h3_ref[...] = h3

    valid = _row_mask(i, tb, n_valid)
    hv = h3 * valid
    ssum2_ref[...] += jnp.sum(hv, axis=0, keepdims=True)
    ssq2_ref[...] += jnp.sum(hv * h3, axis=0, keepdims=True)


# ---------------------------------------------------------------------------
# Stage 3: BN2 -> LeakyReLU -> Linear(256,dim_padded) (lane-dense output).
# ---------------------------------------------------------------------------
def _stage3_kernel(h3_ref, ssum_ref, ssq_ref, g_ref, be_ref, w4_ref, b4_ref,
                   y_ref, *, inv_n):
    scale, shift = _bn_scale_shift(ssum_ref[...], ssq_ref[...],
                                   g_ref[...], be_ref[...], inv_n)
    a = _leaky_relu(h3_ref[...] * scale + shift)
    y = jnp.dot(a.astype(jnp.bfloat16), w4_ref[...],
                preferred_element_type=jnp.float32) + b4_ref[...]
    y_ref[...] = y.astype(y_ref.dtype)


# ---------------------------------------------------------------------------
# Wrapper
# ---------------------------------------------------------------------------
def generator_forward(x, params, *, block_rows=512):
    """Forward pass of the Generator for x of shape (batch, dim), f32."""
    (w1, b1, w2, b2, g1, be1, w3, b3, g2, be2, w4, b4) = params
    B, D = x.shape
    H1 = w1.shape[1]   # 64
    H2 = w2.shape[1]   # 256

    # Batch tile (multiple of 8 sublanes); pad batch up to a whole tile count.
    tb = _round_up(min(block_rows, _round_up(B, 8)), 8)
    bp = _round_up(B, tb)
    n_tiles = bp // tb
    if bp != B:
        x = jnp.pad(x, ((0, bp - B), (0, 0)))

    # Lane-dense output: pad final feature dim to a multiple of 128.
    dp = _round_up(D, 128)
    if dp != D:
        w4 = jnp.pad(w4, ((0, 0), (0, dp - D)))
        b4 = jnp.pad(b4, ((0, 0), (0, dp - D)))

    # Weights feed the MXU in bf16 (f32 accumulation); biases/BN params stay f32.
    w1b, w2b, w3b, w4b = (w.astype(jnp.bfloat16) for w in (w1, w2, w3, w4))

    inv_n = 1.0 / float(B)
    resident = lambda shape: pl.BlockSpec(shape, lambda i: (0, 0))
    tiled = lambda cols: pl.BlockSpec((tb, cols), lambda i: (i, 0))
    stat_shape = jax.ShapeDtypeStruct((1, H2), jnp.float32)

    cparams_acc = pltpu.CompilerParams(
        dimension_semantics=("arbitrary",), vmem_limit_bytes=_VMEM_LIMIT)
    cparams_par = pltpu.CompilerParams(
        dimension_semantics=("parallel",), vmem_limit_bytes=_VMEM_LIMIT)

    # ---- Stage 1 ----------------------------------------------------------
    h2, ssum1, ssq1 = pl.pallas_call(
        functools.partial(_stage1_kernel, tb=tb, n_valid=B),
        grid=(n_tiles,),
        in_specs=[tiled(D), resident((D, H1)), resident((1, H1)),
                  resident((H1, H2)), resident((1, H2))],
        out_specs=(tiled(H2), resident((1, H2)), resident((1, H2))),
        out_shape=(jax.ShapeDtypeStruct((bp, H2), jnp.float32),
                   stat_shape, stat_shape),
        compiler_params=cparams_acc,
    )(x, w1b, b1, w2b, b2)

    # ---- Stage 2 ----------------------------------------------------------
    h3, ssum2, ssq2 = pl.pallas_call(
        functools.partial(_stage2_kernel, tb=tb, n_valid=B, inv_n=inv_n),
        grid=(n_tiles,),
        in_specs=[tiled(H2), resident((1, H2)), resident((1, H2)),
                  resident((1, H2)), resident((1, H2)),
                  resident((H2, H2)), resident((1, H2))],
        out_specs=(tiled(H2), resident((1, H2)), resident((1, H2))),
        out_shape=(jax.ShapeDtypeStruct((bp, H2), jnp.float32),
                   stat_shape, stat_shape),
        compiler_params=cparams_acc,
    )(h2, ssum1, ssq1, g1, be1, w3b, b3)

    # ---- Stage 3 ----------------------------------------------------------
    y = pl.pallas_call(
        functools.partial(_stage3_kernel, inv_n=inv_n),
        grid=(n_tiles,),
        in_specs=[tiled(H2), resident((1, H2)), resident((1, H2)),
                  resident((1, H2)), resident((1, H2)),
                  resident((H2, dp)), resident((1, dp))],
        out_specs=tiled(dp),
        out_shape=jax.ShapeDtypeStruct((bp, dp), jnp.float32),
        compiler_params=cparams_par,
    )(h3, ssum2, ssq2, g2, be2, w4b, b4)

    return y[:B, :D]


# ---------------------------------------------------------------------------
# Parameters / reference
# ---------------------------------------------------------------------------
def init_params(key, dim):
    """Deterministic synthetic parameters (shapes match the PyTorch module)."""
    ks = jax.random.split(key, 8)

    def lin(k, fan_in, fan_out):
        kw, kb = jax.random.split(k)
        # stored as (in, out) so the kernel computes x @ W
        w = jax.random.normal(kw, (fan_in, fan_out), jnp.float32) * 0.1
        b = jax.random.normal(kb, (1, fan_out), jnp.float32) * 0.1
        return w, b

    w1, b1 = lin(ks[0], dim, 64)
    w2, b2 = lin(ks[1], 64, 256)
    w3, b3 = lin(ks[2], 256, 256)
    w4, b4 = lin(ks[3], 256, dim)
    g1 = 1.0 + 0.05 * jax.random.normal(ks[4], (1, 256), jnp.float32)
    be1 = 0.05 * jax.random.normal(ks[5], (1, 256), jnp.float32)
    g2 = 1.0 + 0.05 * jax.random.normal(ks[6], (1, 256), jnp.float32)
    be2 = 0.05 * jax.random.normal(ks[7], (1, 256), jnp.float32)
    return (w1, b1, w2, b2, g1, be1, w3, b3, g2, be2, w4, b4)


def reference_forward(x, params):
    """Pure-JAX reference mirroring the kernel math (bf16 MXU inputs, f32 acc,
    training-mode BN with biased variance and eps=0.8)."""
    (w1, b1, w2, b2, g1, be1, w3, b3, g2, be2, w4, b4) = params
    n = x.shape[0]

    def mm(a, w, b):
        return jnp.dot(a.astype(jnp.bfloat16), w.astype(jnp.bfloat16),
                       preferred_element_type=jnp.float32) + b

    def bn(h, gamma, beta):
        ssum = jnp.sum(h, axis=0, keepdims=True)
        ssq = jnp.sum(h * h, axis=0, keepdims=True)
        scale, shift = _bn_scale_shift(ssum, ssq, gamma, beta, 1.0 / n)
        return h * scale + shift

    h = _leaky_relu(mm(x, w1, b1))
    h = _leaky_relu(bn(mm(h, w2, b2), g1, be1))
    h = _leaky_relu(bn(mm(h, w3, b3), g2, be2))
    return mm(h, w4, b4)


if __name__ == "__main__":
    dim = 16
    batch = 60   # deliberately NOT a multiple of the tile: exercises padding + masked BN stats
    key = jax.random.PRNGKey(0)
    kx, kp = jax.random.split(key)
    x = jax.random.normal(kx, (batch, dim), jnp.float32)
    params = init_params(kp, dim)

    # block_rows=32 -> 2 batch tiles, so cross-tile BN statistics are exercised.
    y = generator_forward(x, params, block_rows=32)
    y = jax.block_until_ready(y)

    y_ref = reference_forward(x, params)
    assert y.shape == (batch, dim)
    max_err = float(jnp.max(jnp.abs(y - y_ref)))
    assert jnp.allclose(y, y_ref, atol=1e-3, rtol=1e-3), f"mismatch vs reference: {max_err}"
    print("KERNEL_OK")
</pallas_src>

<mosaic_0001>
module attributes {stable_mosaic.version = 11 : i64} {
  func.func @_stage1_kernel(%arg0: i32, %arg1: memref<32x16xf32, #tpu.memory_space<vmem>>, %arg2: memref<16x64xbf16, #tpu.memory_space<vmem>>, %arg3: memref<1x64xf32, #tpu.memory_space<vmem>>, %arg4: memref<64x256xbf16, #tpu.memory_space<vmem>>, %arg5: memref<1x256xf32, #tpu.memory_space<vmem>>, %arg6: memref<32x256xf32, #tpu.memory_space<vmem>>, %arg7: memref<1x256xf32, #tpu.memory_space<vmem>>, %arg8: memref<1x256xf32, #tpu.memory_space<vmem>>) attributes {dimension_semantics = [#tpu.dimension_semantics<arbitrary>], iteration_bounds = array<i64: 2>, scalar_prefetch = 0 : i64, scratch_operands = 0 : i64, tpu.core_type = #tpu.core_type<tc>, window_params = [{transform_indices = @transform_0, window_bounds = array<i64: 32, 16>}, {pipeline_mode = #tpu.pipeline_mode<synchronous>, transform_indices = @transform_1, window_bounds = array<i64: 16, 64>}, {pipeline_mode = #tpu.pipeline_mode<synchronous>, transform_indices = @transform_2, window_bounds = array<i64: 1, 64>}, {pipeline_mode = #tpu.pipeline_mode<synchronous>, transform_indices = @transform_3, window_bounds = array<i64: 64, 256>}, {pipeline_mode = #tpu.pipeline_mode<synchronous>, transform_indices = @transform_4, window_bounds = array<i64: 1, 256>}, {transform_indices = @transform_5, window_bounds = array<i64: 32, 256>}, {pipeline_mode = #tpu.pipeline_mode<synchronous>, transform_indices = @transform_6, window_bounds = array<i64: 1, 256>}, {pipeline_mode = #tpu.pipeline_mode<synchronous>, transform_indices = @transform_7, window_bounds = array<i64: 1, 256>}]} {
    %c0_i32 = arith.constant 0 : i32
    %0 = arith.cmpi eq, %arg0, %c0_i32 : i32
    %1 = arith.extui %0 : i1 to i32
    %c0_i32_0 = arith.constant 0 : i32
    %2 = arith.cmpi ne, %1, %c0_i32_0 : i32
    scf.if %2 {
      %cst_25 = arith.constant 0.000000e+00 : f32
      %43 = vector.broadcast %cst_25 : f32 to vector<1x256xf32>
      %c0_26 = arith.constant 0 : index
      %c0_27 = arith.constant 0 : index
      %44 = vector.load %arg7[%c0_26, %c0_27] : memref<1x256xf32, #tpu.memory_space<vmem>>, vector<1x256xf32>
      tpu.vector_store %arg7[%c0_26, %c0_27], %43 {strides = array<i32>} : memref<1x256xf32, #tpu.memory_space<vmem>>, vector<1x256xf32>,
      %cst_28 = arith.constant 0.000000e+00 : f32
      %45 = vector.broadcast %cst_28 : f32 to vector<1x256xf32>
      %c0_29 = arith.constant 0 : index
      %c0_30 = arith.constant 0 : index
      %46 = vector.load %arg8[%c0_29, %c0_30] : memref<1x256xf32, #tpu.memory_space<vmem>>, vector<1x256xf32>
      tpu.vector_store %arg8[%c0_29, %c0_30], %45 {strides = array<i32>} : memref<1x256xf32, #tpu.memory_space<vmem>>, vector<1x256xf32>,
    } else {
    }
    %c0 = arith.constant 0 : index
    %c0_1 = arith.constant 0 : index
    %3 = vector.load %arg1[%c0, %c0_1] : memref<32x16xf32, #tpu.memory_space<vmem>>, vector<32x16xf32>
    %4 = arith.truncf %3 : vector<32x16xf32> to vector<32x16xbf16>
    %c0_2 = arith.constant 0 : index
    %c0_3 = arith.constant 0 : index
    %5 = vector.load %arg2[%c0_2, %c0_3] : memref<16x64xbf16, #tpu.memory_space<vmem>>, vector<16x64xbf16>
    %cst = arith.constant dense<0.000000e+00> : vector<32x64xf32>
    %6 = tpu.matmul %4, %5, %cst {dimension_numbers = #tpu.dot_dimension_numbers<[1], [0], [0], [1], [0, 0, 1, 1], [], []>} : vector<32x16xbf16>, vector<16x64xbf16>, vector<32x64xf32> -> vector<32x64xf32>
    %c0_4 = arith.constant 0 : index
    %c0_5 = arith.constant 0 : index
    %7 = vector.load %arg3[%c0_4, %c0_5] : memref<1x64xf32, #tpu.memory_space<vmem>>, vector<1x64xf32>
    %8 = vector.broadcast %7 : vector<1x64xf32> to vector<32x64xf32>
    %9 = arith.addf %6, %8 : vector<32x64xf32>
    %cst_6 = arith.constant 0.000000e+00 : f32
    %10 = vector.broadcast %cst_6 : f32 to vector<32x64xf32>
    %11 = arith.cmpf ogt, %9, %10 : vector<32x64xf32>
    %cst_7 = arith.constant 2.000000e-01 : f32
    %12 = vector.broadcast %cst_7 : f32 to vector<32x64xf32>
    %13 = arith.mulf %12, %9 : vector<32x64xf32>
    %14 = arith.select %11, %9, %13 : vector<32x64xi1>, vector<32x64xf32>
    %15 = arith.truncf %14 : vector<32x64xf32> to vector<32x64xbf16>
    %c0_8 = arith.constant 0 : index
    %c0_9 = arith.constant 0 : index
    %16 = vector.load %arg4[%c0_8, %c0_9] : memref<64x256xbf16, #tpu.memory_space<vmem>>, vector<64x256xbf16>
    %cst_10 = arith.constant dense<0.000000e+00> : vector<32x256xf32>
    %17 = tpu.matmul %15, %16, %cst_10 {dimension_numbers = #tpu.dot_dimension_numbers<[1], [0], [0], [1], [0, 0, 1, 1], [], []>} : vector<32x64xbf16>, vector<64x256xbf16>, vector<32x256xf32> -> vector<32x256xf32>
    %c0_11 = arith.constant 0 : index
    %c0_12 = arith.constant 0 : index
    %18 = vector.load %arg5[%c0_11, %c0_12] : memref<1x256xf32, #tpu.memory_space<vmem>>, vector<1x256xf32>
    %19 = vector.broadcast %18 : vector<1x256xf32> to vector<32x256xf32>
    %20 = arith.addf %17, %19 : vector<32x256xf32>
    %c0_13 = arith.constant 0 : index
    %c0_14 = arith.constant 0 : index
    %21 = vector.load %arg6[%c0_13, %c0_14] : memref<32x256xf32, #tpu.memory_space<vmem>>, vector<32x256xf32>
    tpu.vector_store %arg6[%c0_13, %c0_14], %20 {strides = array<i32>} : memref<32x256xf32, #tpu.memory_space<vmem>>, vector<32x256xf32>,
    %c32_i32 = arith.constant 32 : i32
    %22 = arith.muli %arg0, %c32_i32 : i32
    %23 = tpu.iota {dimensions = array<i32: 0>} : vector<32x1xi32>
    %24 = vector.broadcast %22 : i32 to vector<32x1xi32>
    %25 = arith.addi %24, %23 : vector<32x1xi32>
    %c60_i32 = arith.constant 60 : i32
    %26 = vector.broadcast %c60_i32 : i32 to vector<32x1xi32>
    %27 = arith.cmpi slt, %25, %26 : vector<32x1xi32>
    %28 = arith.extui %27 : vector<32x1xi1> to vector<32x1xi32>
    %29 = arith.sitofp %28 : vector<32x1xi32> to vector<32x1xf32>
    %30 = vector.broadcast %29 : vector<32x1xf32> to vector<32x256xf32>
    %31 = arith.mulf %20, %30 : vector<32x256xf32>
    %c0_15 = arith.constant 0 : index
    %c0_16 = arith.constant 0 : index
    %32 = vector.load %arg7[%c0_15, %c0_16] : memref<1x256xf32, #tpu.memory_space<vmem>>, vector<1x256xf32>
    %cst_17 = arith.constant dense<0.000000e+00> : vector<256xf32>
    %33 = vector.multi_reduction <add>, %31, %cst_17 [0] : vector<32x256xf32> to vector<256xf32>
    %34 = vector.shape_cast %33 : vector<256xf32> to vector<1x256xf32>
    %35 = arith.addf %32, %34 : vector<1x256xf32>
    %c0_18 = arith.constant 0 : index
    %c0_19 = arith.constant 0 : index
    %36 = vector.load %arg7[%c0_18, %c0_19] : memref<1x256xf32, #tpu.memory_space<vmem>>, vector<1x256xf32>
    tpu.vector_store %arg7[%c0_18, %c0_19], %35 {strides = array<i32>} : memref<1x256xf32, #tpu.memory_space<vmem>>, vector<1x256xf32>,
    %c0_20 = arith.constant 0 : index
    %c0_21 = arith.constant 0 : index
    %37 = vector.load %arg8[%c0_20, %c0_21] : memref<1x256xf32, #tpu.memory_space<vmem>>, vector<1x256xf32>
    %38 = arith.mulf %31, %20 : vector<32x256xf32>
    %cst_22 = arith.constant dense<0.000000e+00> : vector<256xf32>
    %39 = vector.multi_reduction <add>, %38, %cst_22 [0] : vector<32x256xf32> to vector<256xf32>
    %40 = vector.shape_cast %39 : vector<256xf32> to vector<1x256xf32>
    %41 = arith.addf %37, %40 : vector<1x256xf32>
    %c0_23 = arith.constant 0 : index
    %c0_24 = arith.constant 0 : index
    %42 = vector.load %arg8[%c0_23, %c0_24] : memref<1x256xf32, #tpu.memory_space<vmem>>, vector<1x256xf32>
    tpu.vector_store %arg8[%c0_23, %c0_24], %41 {strides = array<i32>} : memref<1x256xf32, #tpu.memory_space<vmem>>, vector<1x256xf32>,
    return
  }
  func.func @transform_0(%arg0: i32) -> (i32, i32) {
    %c0_i32 = arith.constant 0 : i32
    %c0_i32_0 = arith.constant 0 : i32
    return %arg0, %c0_i32 : i32, i32
  }
  func.func @transform_1(%arg0: i32) -> (i32, i32) {
    %c0_i32 = arith.constant 0 : i32
    %c0_i32_0 = arith.constant 0 : i32
    %c0_i32_1 = arith.constant 0 : i32
    return %c0_i32, %c0_i32_0 : i32, i32
  }
  func.func @transform_2(%arg0: i32) -> (i32, i32) {
    %c0_i32 = arith.constant 0 : i32
    %c0_i32_0 = arith.constant 0 : i32
    %c0_i32_1 = arith.constant 0 : i32
    return %c0_i32, %c0_i32_0 : i32, i32
  }
  func.func @transform_3(%arg0: i32) -> (i32, i32) {
    %c0_i32 = arith.constant 0 : i32
    %c0_i32_0 = arith.constant 0 : i32
    %c0_i32_1 = arith.constant 0 : i32
    return %c0_i32, %c0_i32_0 : i32, i32
  }
  func.func @transform_4(%arg0: i32) -> (i32, i32) {
    %c0_i32 = arith.constant 0 : i32
    %c0_i32_0 = arith.constant 0 : i32
    %c0_i32_1 = arith.constant 0 : i32
    return %c0_i32, %c0_i32_0 : i32, i32
  }
  func.func @transform_5(%arg0: i32) -> (i32, i32) {
    %c0_i32 = arith.constant 0 : i32
    %c0_i32_0 = arith.constant 0 : i32
    return %arg0, %c0_i32 : i32, i32
  }
  func.func @transform_6(%arg0: i32) -> (i32, i32) {
    %c0_i32 = arith.constant 0 : i32
    %c0_i32_0 = arith.constant 0 : i32
    %c0_i32_1 = arith.constant 0 : i32
    return %c0_i32, %c0_i32_0 : i32, i32
  }
  func.func @transform_7(%arg0: i32) -> (i32, i32) {
    %c0_i32 = arith.constant 0 : i32
    %c0_i32_0 = arith.constant 0 : i32
    %c0_i32_1 = arith.constant 0 : i32
    return %c0_i32, %c0_i32_0 : i32, i32
  }
}

</mosaic_0001>

<bundles_post_ra>
// kernel: tpu_custom_call.1
= control target key start
LH: loop header
LB: loop body
LE: loop exit
PB: predicated region body
PF: predicated region fallthrough
CT: control target
= control target key end

     0   :  { %13 = vsyncpa [#allocation3], 0  ;;  %s1281_s0 = inlined_call_operand.vmem [shape: f32[64,16], index: 0, kind: input, shape index: {}]   ;;  %s1282_s1 = inlined_call_operand.vmem [shape: bf16[16,64], index: 1, kind: input, shape index: {}]   ;;  %s1283_s2 = inlined_call_operand.vmem [shape: f32[1,64], index: 2, kind: input, shape index: {}]   ;;  %s1284_s3 = inlined_call_operand.vmem [shape: bf16[64,256], index: 3, kind: input, shape index: {}]   ;;  %s1285_s4 = inlined_call_operand.vmem [shape: f32[1,256], index: 4, kind: input, shape index: {}]   ;;  %s1286_s5 = inlined_call_operand.hbm [shape: f32[64,256], index: 5, kind: output, shape index: {0}]   ;;  %s1287_s6 = inlined_call_operand.hbm [shape: f32[1,256], index: 6, kind: output, shape index: {1}]   ;;  %s1288_s7 = inlined_call_operand.hbm [shape: f32[1,256], index: 7, kind: output, shape index: {2}]  }
   0x1   :  { %15 = vsyncpa [#allocation3 + $0x1], 0 }
   0x2   :  { %16 = vsyncpa [#allocation5], 0  ;;  %s1044_s24 = smov 0   ;;  %s1046_s25 = smov 0  }
   0x3   :  { %s1048_s26 = smov 0   ;;  %s1050_s27 = smov 0  }
   0x4 LB: > { %s1065_s28 = sadd.s32 4294967295, %s993_s27   ;;  %s747_s29 = sadd.s32 4294967294, %s993_s27   ;;  %s993_s27 = sphi %s1050_s27, %s1296_s27   ;;  %s989_s26 = sphi %s1048_s26, %s1295_s26   ;;  %s985_s25 = sphi %s1046_s25, %s1294_s25   ;;  %s981_s24 = sphi %s1044_s24, %s1293_s24  }
   0x5   : > { %s1069_s30 = sadd.s32 1, %s993_s27   ;;  %s139_s8 = sadd.s32 1, %s989_s26 }
   0x6   : > { %s136_s9 = ssub.s32 %s993_s27, %s1069_s30  ;;  %p149_p0 = scmp.ne.s32.totalorder %s989_s26, %s985_s25 }
   0x7   : > { %p137_p1 = scmp.eq.s32.totalorder %s136_s9, 0  ;;  %p150_p2 = scmp.eq.s32.totalorder %s1065_s28, 1 }
   0x8   : > { %p155_p3 = scmp.ne.s32.totalorder %s985_s25, %s981_s24  ;;  %p156_p4 = scmp.eq.s32.totalorder %s747_s29, 1 }
   0x9   : > { %s1080_s10 = scalar_select %p137_p1, %s989_s26, %s139_s8  }
   0xa   : > { %p1084_p5 = por %p150_p2, %p149_p0  ;;  %p1088_p6 = por %p156_p4, %p155_p3 }
   0xb   : > { %p750_p7 = scmp.ge.s32.totalorder %s993_s27, 1  ;;  %p237_p8 = scmp.lt.s32.totalorder %s993_s27, 3 }
   0xd   : > { %p238_p9 = pnand %p750_p7, %p237_p8 }
   0xe   : > { %s262_s13 = sand.u32 (!%p238_p9), 1, %s985_s25   ;;  %s752_s14 = sshll.u32 (!%p238_p9), %s1065_s28, 2 }
   0xf   : > { %241 = sbr.rel (%p238_p9) target bundleno = 549 (0x225), region = 40  ;;  %s751_s15 = sshll.u32 (!%p238_p9), %s262_s13, 6 }
  0x10   : > { %p270_p10 = scmp.lt.s32.totalorder (!%p238_p9), %s752_s14, 7  ;;  %s1101_s20 = scalar_lea.vmem (!%p238_p9), [#allocation2], %s751_s15 }
  0x11   : > { %p754_p11 = scmp.ne.s32.totalorder (!%p238_p9), %s1065_s28, 0 }
  0x16   : > { %s1298_s14 = smov (!%p270_p10, %s752_s14), 7  ;;  %280 = sbr.rel (%p754_p11) target bundleno = 29 (0x1d), region = 44 }
  0x17   : > { %s753_s16 = sshll.u32 %s1298_s14, 3  ;;  %v281_v0 = vlaneseq (!%p754_p11)  ;;  %v995_v1 = vmov (!%p754_p11), 0.0  }
  0x18   : > { %s273_s19 = scalar_lea.vmem %s1281_s0, %s753_s16 }
  0x19   : > { %vm283_vm0 = vcmp.lt.s32.totalorder (!%p754_p11), %v281_v0, 256 }
  0x1a   : > { %285 = vst.msk [vmem:[#allocation4] sm:$0x3] (!%p754_p11), %vm283_vm0, %v995_v1  ;;  %286 = vst.msk [vmem:[#allocation6] sm:$0x3] (!%p754_p11), %vm283_vm0, %v995_v1 }
  0x1d PF: > { %v862_v2 = vld [vmem:[%s1282_s1] sm:$0xff]   ;;  %v288_v4 = vld [vmem:[%s273_s19 + $0x8] sm:$0xff]  ;;  %vm308_vm1 = vcmask 130048   ;;  %v289_v5 = vld [vmem:[%s273_s19 + $0x10] sm:$0xff]  ;;  %v996_v17 = vmov 0   ;;  %vm438_vm6 = vcmask 523264   ;;  %v388_v37 = vlaneseq }
  0x1e   : > { %v287_v3 = vld [vmem:[%s273_s19] sm:$0xff]  ;;  %789 = vmatprep.subr.bf16.mxu0 %v862_v2  ;;  %v290_v7 = vld [vmem:[%s273_s19 + $0x18] sm:$0xff]  ;;  %487 = vmatprep.mubr.bf16.mxu1 %v996_v17  ;;  %s769_s16 = sshll.u32 %s1065_s28, 5  ;;  %v997_v55 = vmov 0.0   ;;  %s785_s19 = sshll.u32 %s1065_s28, 10 }
  0x1f   : > { %v291_v6 = vpack.c.bf16 %v288_v4, %v287_v3  ;;  %790 = vmatpush3.bf16.msra.mxu0 %v862_v2  ;;  %v292_v8 = vpack.c.bf16 %v290_v7, %v289_v5  ;;  %v863_v9 = vld [vmem:[%s1284_s3 + $0x4] ss:$8 sps:$4 sm:$0xff]   ;;  %v865_v10 = vld [vmem:[%s1284_s3] ss:$8 sps:$4 sm:$0xff]   ;;  %v866_v11 = vld [vmem:[%s1284_s3 + $0x14] ss:$8 sps:$4 sm:$0xff]   ;;  %v512_v39 = vstv %s769_s16  ;;  %s1164_s29 = scalar_lea.hbm %s1286_s5, %s785_s19 }
  0x20   : > { %795 = vmatprep.subr.bf16.mxu1 %v863_v9  ;;  %445 = vmatprep.subr.bf16.mxu0 %v863_v9  ;;  %v868_v12 = vld [vmem:[%s1284_s3 + $0x10] ss:$8 sps:$4 sm:$0xff]   ;;  %v869_v13 = vld [vmem:[%s1284_s3 + $0x24] ss:$8 sps:$4 sm:$0xff]   ;;  %v871_v14 = vld [vmem:[%s1284_s3 + $0x20] ss:$8 sps:$4 sm:$0xff]  }
  0x21   : > { %791 = vmatprep.mubr.msk.bf16.mxu0 %vm308_vm1, %v291_v6  ;;  %799 = vmatpush1.bf16.msra.mxu1 %v865_v10  ;;  %v872_v15 = vld [vmem:[%s1284_s3 + $0x34] ss:$8 sps:$4 sm:$0xff]   ;;  %v874_v16 = vld [vmem:[%s1284_s3 + $0x30] ss:$8 sps:$4 sm:$0xff]   ;;  %v755_v18 = vld [vmem:[%s1283_s2] ss:$0 sm:$0xff] }
  0x22   : > { %792 = vmatmul.mubr.msk.bf16.vlgmr.msra.gmra.mrb[0].mxu0 %vm308_vm1, %v292_v8  ;;  %796 = vmatprep.subr.bf16.mxu1 %v866_v11  ;;  %v1135_v38 = vshrl.u32 %v388_v37, 7  ;;  %v386_v43 = vld [vmem:[%s1285_s4] sm:$0x3]  ;;  %s642_s21 = sshll.u32 %s1101_s20, 4  ;;  %s1180_s8 = scalar_lea.sflag [#allocation3], %s262_s13  ;;  %s1166_s21 = int_to_ptr.vmem [resolvable:$true] %s642_s21 }
  0x23   : > { %446 = vmatpush1.bf16.msra.mxu0 %v865_v10  ;;  %477 = vmatprep.mubr.bf16.mxu0 %v996_v17  ;;  %s875_s9 = scalar_lea.vmem %s1166_s21, 1024  ;;  %s998_s14 = smov [#allocation2]  }
  0x24   : > { %447 = vmatprep.subr.bf16.mxu0 %v866_v11  ;;  %v510_v40 = vadd.s32 16, %v1135_v38  ;;  %v509_v41 = vadd.s32 8, %v1135_v38  ;;  %v390_v42 = vsub.s32 0, %v1135_v38  ;;  %v513_v44 = vadd.s32 %v512_v39, %v1135_v38  ;;  %p876_p12 = scmp.ne.s32.totalorder %s1166_s21, %s875_s9  ;;  %s879_s15 = sshll.u32 %s998_s14, 4  ;;  %s880_s15 = int_to_ptr.vmem [resolvable:$false] %s879_s15 }
  0x25   : > { %800 = vmatpush1.bf16.msra.mxu1 %v868_v12  ;;  %v394_v45 = vsub.s32 1, %v1135_v38  ;;  %v511_v46 = vadd.s32 24, %v1135_v38  ;;  %s881_s16 = scalar_lea.vmem %s880_s15, 2048  ;;  %p882_p1 = scmp.lt.s32.totalorder %s1166_s21, %s880_s15 }
  0x26   : > { %797 = vmatprep.subr.bf16.mxu1 %v869_v13  ;;  %v515_v47 = vadd.s32 %v512_v39, %v510_v40  ;;  %v514_v48 = vadd.s32 %v512_v39, %v509_v41  ;;  %v391_v49 = vrot.slane %v386_v43, %v390_v42  ;;  %vm517_vm7 = vcmp.lt.s32.totalorder %v513_v44, 60  ;;  %p877_p13 = pnand %p876_p12, %p1084_p5  ;;  %p883_p3 = scmp.lt.s32.totalorder %s881_s16, %s875_s9 }
  0x27   : > { %448 = vmatpush1.bf16.msra.mxu0 %v868_v12  ;;  %v395_v50 = vrot.slane %v386_v43, %v394_v45  ;;  %v516_v51 = vadd.s32 %v512_v39, %v511_v46  ;;  %v770_v56 = vsel %vm517_vm7, 1.0, %v997_v55 }
  0x28   : > { %449 = vmatprep.subr.bf16.mxu0 %v869_v13  ;;  %vm519_vm8 = vcmp.lt.s32.totalorder %v515_v47, 60  ;;  %vm518_vm9 = vcmp.lt.s32.totalorder %v514_v48, 60  ;;  %p878_p0 = pneg %p877_p13  ;;  %p884_p4 = por %p883_p3, %p882_p1 }
  0x29   : > { %801 = vmatpush1.bf16.msra.mxu1 %v871_v14  ;;  %vm520_vm10 = vcmp.lt.s32.totalorder %v516_v51, 60  ;;  %v772_v62 = vsel %vm519_vm8, 1.0, %v997_v55  ;;  %v771_v2 = vsel %vm518_vm9, 1.0, %v997_v55 }
  0x2a   : > { %798 = vmatprep.subr.bf16.mxu1 %v872_v15  ;;  %v773_v9 = vsel %vm520_vm10, 1.0, %v997_v55  ;;  %p885_p7 = pnand %p884_p4, %p878_p0 }
  0x2b   : > { %450 = vmatpush1.bf16.msra.mxu0 %v871_v14 }
  0x2c   : > { %451 = vmatprep.subr.bf16.mxu0 %v872_v15 }
  0x2d   : > { %802 = vmatpush1.bf16.msra.mxu1 %v874_v16 }
  0x2f   : > { %452 = vmatpush1.bf16.msra.mxu0 %v874_v16 }
  0xf5   : > { %v793_v19 = vpop.f32.mrb[0].mxu0 }
  0xf6   : > { %v358_v20 = vadd.f32 %v793_v19, %v755_v18  ;;  %v349_v21 = vpop.f32.mrb[1].mxu0 }
  0xf7   : > { %v350_v22 = vadd.f32 %v755_v18, %v349_v21  ;;  %v794_v23 = vpop.f32.mrb[2].mxu0 }
  0xf8   : > { %v370_v24 = vmul.f32 0.2, %v358_v20  ;;  %v361_v25 = vadd.f32 %v794_v23, %v755_v18  ;;  %v352_v26 = vpop.f32.mrb[3].mxu0  ;;  %vm366_vm2 = vcmp.gt.f32.partialorder %v358_v20, 0.0 }
  0xf9   : > { %v368_v27 = vmul.f32 0.2, %v350_v22  ;;  %v353_v28 = vadd.f32 %v755_v18, %v352_v26  ;;  %vm364_vm3 = vcmp.gt.f32.partialorder %v350_v22, 0.0 }
  0xfa   : > { %vm367_vm4 = vcmp.gt.f32.partialorder %v361_v25, 0.0  ;;  %v371_v29 = vmul.f32 0.2, %v361_v25  ;;  %v374_v31 = vsel %vm366_vm2, %v358_v20, %v370_v24 }
  0xfb   : > { %vm365_vm5 = vcmp.gt.f32.partialorder %v353_v28, 0.0  ;;  %v369_v30 = vmul.f32 0.2, %v353_v28  ;;  %v372_v33 = vsel %vm364_vm3, %v350_v22, %v368_v27 }
  0xfc   : > { %v375_v32 = vsel %vm367_vm4, %v361_v25, %v371_v29 }
  0xfd   : > { %v377_v34 = vpack.c.bf16 %v375_v32, %v374_v31  ;;  %v373_v35 = vsel %vm365_vm5, %v353_v28, %v369_v30 }
  0xfe   : > { %v376_v36 = vpack.c.bf16 %v373_v35, %v372_v33 }
  0xff   : > { %768 = vmatmul.mubr.msk.bf16.vlgmr.msra.gmra.mrb[0].mxu1 %vm438_vm6, %v377_v34 }
 0x100   : > { %767 = vmatmul.mubr.msk.bf16.vlgmr.msra.gmra.mrb[4].mxu0 %vm438_vm6, %v376_v36 }
 0x1d2   : > { %v489_v52 = vpop.f32.mrb[0].mxu1 }
 0x1d3   : > { %v1147_v53 = vadd.f32 %v489_v52, %v391_v49  ;;  %v479_v54 = vpop.f32.mrb[4].mxu0  ;;  %v491_v57 = vpop.f32.mrb[1].mxu1 }
 0x1d4   : > { %v480_v58 = vadd.f32 %v479_v54, %v391_v49  ;;  %v1151_v59 = vadd.f32 %v491_v57, %v395_v50  ;;  %v481_v60 = vpop.f32.mrb[5].mxu0  ;;  %v493_v61 = vpop.f32.mrb[2].mxu1 }
 0x1d5   : > { %502 = vst [vmem:[%s1101_s20 + $0x20] sm:$0xff] %v1147_v53  ;;  %v482_v63 = vadd.f32 %v481_v60, %v395_v50  ;;  %v1155_v0 = vadd.f32 %v493_v61, %v391_v49  ;;  %v483_v1 = vpop.f32.mrb[6].mxu0  ;;  %v495_v3 = vpop.f32.mrb[3].mxu1  ;;  %v533_v11 = vmul.f32 %v772_v62, %v1147_v53 }
 0x1d6   : > { %498 = vst [vmem:[%s1101_s20] sm:$0xff] %v480_v58  ;;  %v529_v4 = vmul.f32 %v770_v56, %v480_v58  ;;  %503 = vst [vmem:[%s1101_s20 + $0x28] sm:$0xff] %v1151_v59  ;;  %v484_v5 = vadd.f32 %v483_v1, %v391_v49  ;;  %v496_v6 = vadd.f32 %v495_v3, %v395_v50  ;;  %v485_v7 = vpop.f32.mrb[7].mxu0 }
 0x1d7   : > { %499 = vst [vmem:[%s1101_s20 + $0x8] sm:$0xff] %v482_v63  ;;  %v530_v8 = vmul.f32 %v770_v56, %v482_v63  ;;  %504 = vst [vmem:[%s1101_s20 + $0x30] sm:$0xff] %v1155_v0  ;;  %v486_v10 = vadd.f32 %v485_v7, %v395_v50  ;;  %v534_v13 = vmul.f32 %v772_v62, %v1151_v59 }
 0x1d8   : > { %500 = vst [vmem:[%s1101_s20 + $0x10] sm:$0xff] %v484_v5  ;;  %v531_v12 = vmul.f32 %v771_v2, %v484_v5  ;;  %505 = vst [vmem:[%s1101_s20 + $0x38] sm:$0xff] %v496_v6  ;;  %v581_v15 = vmul.f32 %v529_v4, %v480_v58  ;;  %v535_v16 = vmul.f32 %v773_v9, %v1155_v0 }
 0x1d9   : > { %501 = vst [vmem:[%s1101_s20 + $0x18] sm:$0xff] %v486_v10  ;;  %v532_v14 = vmul.f32 %v771_v2, %v486_v10 }
 0x1da   : > { %v538_v17 = vadd.f32 %v531_v12, %v529_v4  ;;  %v583_v18 = vmul.f32 %v531_v12, %v484_v5 }
 0x1db   : > { %888 = shalt.err (!%p885_p7)
}
 0x1dc   : > { %s889_s13 = scalar_lea.hbm %s1164_s29, 1024  ;;  %s893_s18 = scalar_lea.hbm %s1286_s5, 2048 }
 0x1dd   : > { %p890_p8 = scmp.ne.s32.totalorder %s1164_s29, %s889_s13  ;;  %p894_p11 = scmp.lt.u32.totalorder %s1164_s29, %s1286_s5 }
 0x1de   : > { %p895_p12 = scmp.lt.u32.totalorder %s893_s18, %s889_s13  ;;  %p897_p0 = scmp.lt.u32.totalorder %s889_s13, %s1164_s29 }
 0x1df   : > { %p891_p9 = pnand %p890_p8, %p1084_p5 }
 0x1e0   : > { %p896_p13 = por %p895_p12, %p894_p11 }
 0x1e1   : > { %p892_p10 = pneg %p891_p9 }
 0x1e2   : > { %p898_p1 = por %p897_p0, %p896_p13 }
 0x1e4   : > { %p899_p3 = pnand %p898_p1, %p892_p10 }
 0x1e6   : > { %902 = shalt.err (!%p899_p3)
}
 0x1e7   : > { %s999_s23 = smov 256   ;;  %s1000_s9 = smov 16   ;;  %v582_v19 = vmul.f32 %v530_v8, %v482_v63  ;;  %v536_v20 = vmul.f32 %v773_v9, %v496_v6  ;;  %v547_v21 = vadd.f32 %v532_v14, %v530_v8  ;;  %v584_v22 = vmul.f32 %v532_v14, %v486_v10  ;;  %v580_v10 = vld [vmem:[#allocation6] sm:$0x3] }
 0x1e8   : > { %803 = dma.vmem_to_hbm [thread:$0]  (%p1084_p5), %s1166_s21, 1024, %s1164_s29, %s1180_s8, %s999_s23, %s999_s23, %s1000_s9   ;;  %v585_v23 = vmul.f32 %v533_v11, %v1147_v53  ;;  %v539_v24 = vadd.f32 %v538_v17, %v533_v11  ;;  %v589_v25 = vadd.f32 %v583_v18, %v581_v15  ;;  %v586_v26 = vmul.f32 %v534_v13, %v1151_v59 }
 0x1e9   : > { %v548_v27 = vadd.f32 %v547_v21, %v534_v13  ;;  %v598_v28 = vadd.f32 %v584_v22, %v582_v19  ;;  %v587_v29 = vmul.f32 %v535_v16, %v1155_v0  ;;  %v588_v32 = vmul.f32 %v536_v20, %v496_v6  ;;  %v537_v6 = vld [vmem:[#allocation4] sm:$0x3]  ;;  %s1002_s11 = smov [#allocation4]   ;;  %s1003_s29 = smov [#allocation6]  }
 0x1ea   : > { %v540_v30 = vadd.f32 %v539_v24, %v535_v16  ;;  %v590_v31 = vadd.f32 %v589_v25, %v585_v23  ;;  %v1001_v45 = vmov 1966171168   ;;  %s656_s21 = sshll.u32 %s1002_s11, 4  ;;  %vm1209_vm11 = vcmp.lt.s32.totalorder %v388_v37, 256  ;;  %s667_s8 = sshll.u32 %s1003_s29, 4  ;;  %s657_s21 = int_to_ptr.vmem [resolvable:$true] %s656_s21  ;;  %s1215_s8 = int_to_ptr.vmem [resolvable:$true] %s667_s8 }
 0x1eb   : > { %v549_v33 = vadd.f32 %v548_v27, %v536_v20  ;;  %v599_v34 = vadd.f32 %v598_v28, %v586_v26  ;;  %v560_v46 = vunpack.c.l.s4 %v1001_v45  ;;  %s903_s14 = scalar_lea.vmem %s657_s21, 32  ;;  %p910_p8 = scmp.lt.s32.totalorder %s657_s21, %s657_s21 }
 0x1ec   : > { %v541_v35 = vrot.slane %v540_v30, 4  ;;  %v591_v36 = vadd.f32 %v590_v31, %v587_v29  ;;  %p904_p5 = scmp.ne.s32.totalorder %s657_s21, %s903_s14  ;;  %p911_p9 = scmp.lt.s32.totalorder %s903_s14, %s903_s14 }
 0x1ed   : > { %v550_v39 = vrot.slane %v549_v33, 4  ;;  %v600_v40 = vadd.f32 %v599_v34, %v588_v32  ;;  %v561_v55 = vunpack.c.0.s8 %v560_v46 }
 0x1ee   : > { %v542_v41 = vadd.f32 %v541_v35, %v540_v30  ;;  %v592_v42 = vrot.slane %v591_v36, 4  ;;  %p905_p4 = pnand %p904_p5, %p150_p2  ;;  %p912_p10 = por %p911_p9, %p910_p8 }
 0x1ef   : > { %v551_v43 = vadd.f32 %v550_v39, %v549_v33  ;;  %v601_v44 = vrot.slane %v600_v40, 4  ;;  %v564_v63 = vsub.s32 %v561_v55, %v1135_v38 }
 0x1f0   : > { %v543_v47 = vrot.slane %v542_v41, 2  ;;  %v593_v48 = vadd.f32 %v592_v42, %v591_v36  ;;  %p906_p7 = pneg %p905_p4 }
 0x1f1   : > { %v552_v49 = vrot.slane %v551_v43, 2  ;;  %v602_v50 = vadd.f32 %v601_v44, %v600_v40 }
 0x1f2   : > { %v594_v51 = vrot.slane %v593_v48, 2  ;;  %v544_v52 = vadd.f32 %v543_v47, %v542_v41  ;;  %p913_p11 = pnand %p912_p10, %p906_p7 }
 0x1f3   : > { %v603_v53 = vrot.slane %v602_v50, 2  ;;  %v553_v54 = vadd.f32 %v552_v49, %v551_v43 }
 0x1f4   : > { %v545_v56 = vrot.slane %v544_v52, 1  ;;  %v595_v57 = vadd.f32 %v594_v51, %v593_v48 }
 0x1f5   : > { %v554_v58 = vrot.slane %v553_v54, 1  ;;  %v604_v59 = vadd.f32 %v603_v53, %v602_v50 }
 0x1f6   : > { %v546_v60 = vadd.f32 %v545_v56, %v544_v52  ;;  %v596_v61 = vrot.slane %v595_v57, 1 }
 0x1f7   : > { %v555_v62 = vadd.f32 %v554_v58, %v553_v54  ;;  %v605_v0 = vrot.slane %v604_v59, 1 }
 0x1f8   : > { %v597_v1 = vadd.f32 %v596_v61, %v595_v57 }
 0x1f9   : > { %v558_v2 = vcombine.low %v546_v60, %v555_v62  ;;  %v606_v3 = vadd.f32 %v605_v0, %v604_v59 }
 0x1fb   : > { %v565_v4 = vrot.slane %v558_v2, %v564_v63  ;;  %v609_v5 = vcombine.low %v597_v1, %v606_v3 }
 0x1fd   : > { %v572_v7 = vrot.slane %v565_v4, %v564_v63  ;;  %v616_v8 = vrot.slane %v609_v5, %v564_v63 }
 0x1ff   : > { %v574_v38 = vadd.f32 %v572_v7, %v537_v6  ;;  %v623_v11 = vrot.slane %v616_v8, %v564_v63 }
 0x201   : > { %579 = vst.msk [vmem:[#allocation4] sm:$0x3] %vm1209_vm11, %v574_v38  ;;  %v625_v12 = vadd.f32 %v623_v11, %v580_v10 }
 0x202   : > { %916 = shalt.err (!%p913_p11)
}
 0x203   : > { %s917_s13 = scalar_lea.hbm %s1287_s6, 32 }
 0x204   : > { %p918_p12 = scmp.ne.s32.totalorder %s1287_s6, %s917_s13  ;;  %p923_p1 = scmp.lt.u32.totalorder %s917_s13, %s1287_s6 }
 0x206   : > { %p919_p13 = pnand %p918_p12, %p150_p2 }
 0x208   : > { %p920_p0 = pneg %p919_p13 }
 0x20a   : > { %p925_p3 = pnand %p923_p1, %p920_p0 }
 0x20c   : > { %928 = shalt.err (!%p925_p3)
}
 0x20d   : > { %805 = dma.vmem_to_hbm [thread:$0]  (%p150_p2), %s657_s21, 32, %s1287_s6, [#allocation5]   ;;  %626 = vst.msk [vmem:[#allocation6] sm:$0x3] %vm1209_vm11, %v625_v12 }
 0x20e   : > { %s929_s9 = scalar_lea.vmem %s1215_s8, 32  ;;  %p936_p8 = scmp.lt.s32.totalorder %s1215_s8, %s1215_s8 }
 0x20f   : > { %p930_p5 = scmp.ne.s32.totalorder %s1215_s8, %s929_s9  ;;  %p937_p9 = scmp.lt.s32.totalorder %s929_s9, %s929_s9 }
 0x211   : > { %p931_p4 = pnand %p930_p5, %p150_p2  ;;  %p938_p10 = por %p937_p9, %p936_p8 }
 0x213   : > { %p932_p7 = pneg %p931_p4 }
 0x215   : > { %p939_p11 = pnand %p938_p10, %p932_p7 }
 0x217   : > { %942 = shalt.err (!%p939_p11)
}
 0x218   : > { %s943_s14 = scalar_lea.hbm %s1288_s7, 32 }
 0x219   : > { %p944_p12 = scmp.ne.s32.totalorder %s1288_s7, %s943_s14  ;;  %p949_p1 = scmp.lt.u32.totalorder %s943_s14, %s1288_s7 }
 0x21b   : > { %p945_p13 = pnand %p944_p12, %p150_p2 }
 0x21d   : > { %p946_p0 = pneg %p945_p13 }
 0x21f   : > { %p951_p3 = pnand %p949_p1, %p946_p0 }
 0x221   : > { %954 = shalt.err (!%p951_p3)
}
 0x222   : > { %807 = dma.vmem_to_hbm [thread:$0]  (%p150_p2), %s1215_s8, 32, %s1288_s7, [#allocation5]  }
 0x223   : > { %972 = dma.done.wait (%p150_p2), [#allocation5], 64  }
 0x224   : > { %974 = vsyncadd (%p150_p2), [#allocation5], 4294967232 }
 0x225 PF: > { %p821_p5 = scmp.ge.s32.totalorder %s993_s27, 2  ;;  %s687_s18 = sand.u32 1, %s981_s24  }
 0x226   : > { %s688_s19 = scalar_lea.sflag [#allocation3], %s687_s18 }
 0x227   : > { %p814_p4 = pnand %p821_p5, %p1088_p6 }
 0x229   : > { %976 = dma.done.wait (!%p814_p4), %s688_s19, 1024  }
 0x22a   : > { %978 = vsyncadd (!%p814_p4), %s688_s19, 4294966272  ;;  %p19_p7 = scmp.ge.s32.totalorder %s1069_s30, 4   ;;  %s1293_s24 = smov %s985_s25 }
 0x22b   : > { %s1294_s25 = smov %s989_s26  ;;  %s1295_s26 = smov %s1080_s10 }
 0x22c   : > { %s1296_s27 = smov %s1069_s30  ;;  %21 = sbr.rel (!%p19_p7) target bundleno = 4 (0x4), region = 95 }
 0x233   :  { %693 = vsyncpa [#allocation3], 1 }
 0x234   :  { %695 = vsyncpa [#allocation3 + $0x1], 1 }
 0x235   :  { %696 = vsyncpa [#allocation5], 1 }

</bundles_post_ra>
